<compile_context>
chip_gen: v5e
topology: v5e:2x2
jax: 0.10.0
libtpu: 0.0.40
codegen_flags: <defaults>
</compile_context>

<pallas_src>
import functools

import jax
import jax.numpy as jnp
from jax.experimental import pallas as pl
from jax.experimental.pallas import tpu as pltpu


def _round_up(x, m):
    return ((x + m - 1) // m) * m


# Conservative per-kernel VMEM working-set budget so the tile choices made here
# also fit the 64 MiB v7x part (v5e/v6e have 128 MiB physical).
_VMEM_BUDGET = 48 * 1024 * 1024
_HEADROOM = 8 * 1024 * 1024
_VMEM_LIMIT = 56 * 1024 * 1024  # scoped-vmem limit handed to Mosaic


def _leaky_relu(y, slope):
    if slope == 0.0:
        return jnp.maximum(y, 0.0)
    return jnp.where(y > 0, y, slope * y)


# ----------------------------------------------------------------------------
# Kernel 1: fused multi-layer encoder projection (densely packed output)
# ----------------------------------------------------------------------------
def _encoder_kernel(x_ref, *refs, n_layers, negative_slope, d_valid):
    """refs = (w0, b0, w1, b1, ..., out_ref).

    h_{l+1} = LeakyReLU(h_l @ W_l + b_l); the per-layer hidden states are
    concatenated densely and written once (zero-padded to the lane-aligned
    output width).  Weights bf16 (MXU path); bias/accum/activation in f32.
    """
    out_ref = refs[-1]
    h = x_ref[...]  # bf16 [tile_n, F0_pad]
    outs = []
    for l in range(n_layers):
        w = refs[2 * l][...]        # bf16 [in, H]
        b = refs[2 * l + 1][...]    # f32  [1, H]
        y = jnp.dot(h, w, preferred_element_type=jnp.float32) + b
        y = _leaky_relu(y, negative_slope)
        outs.append(y)
        h = y.astype(jnp.bfloat16)
    d_pad = out_ref.shape[-1]
    if d_pad > d_valid:
        outs.append(jnp.zeros((out_ref.shape[0], d_pad - d_valid), jnp.float32))
    out_ref[...] = jnp.concatenate(outs, axis=-1)


def pallas_encoder(x_pad, enc_w_pad, enc_b_pad, d_pad, *, negative_slope, tile_n):
    n_pad, f0 = x_pad.shape
    n_layers = len(enc_w_pad)
    h_dim = enc_w_pad[0].shape[1]
    d_valid = h_dim * n_layers

    in_specs = [pl.BlockSpec((tile_n, f0), lambda i: (i, 0))]
    flat = []
    for l in range(n_layers):
        in_d = enc_w_pad[l].shape[0]
        in_specs.append(pl.BlockSpec((in_d, h_dim), lambda i: (0, 0)))   # W_l (resident)
        in_specs.append(pl.BlockSpec((1, h_dim), lambda i: (0, 0)))      # b_l (resident)
        flat += [enc_w_pad[l], enc_b_pad[l]]

    flops = 2 * n_pad * (f0 * h_dim + max(n_layers - 1, 0) * h_dim * h_dim)
    bytes_accessed = (
        n_pad * f0 * 2 + n_pad * d_pad * 4
        + sum(int(w.size) * 2 + int(b.size) * 4 for w, b in zip(enc_w_pad, enc_b_pad))
    )

    return pl.pallas_call(
        functools.partial(
            _encoder_kernel, n_layers=n_layers,
            negative_slope=negative_slope, d_valid=d_valid,
        ),
        out_shape=jax.ShapeDtypeStruct((n_pad, d_pad), jnp.float32),
        grid=(n_pad // tile_n,),
        in_specs=in_specs,
        out_specs=pl.BlockSpec((tile_n, d_pad), lambda i: (i, 0)),
        compiler_params=pltpu.CompilerParams(
            dimension_semantics=("parallel",),
            vmem_limit_bytes=_VMEM_LIMIT,
        ),
        cost_estimate=pl.CostEstimate(
            flops=int(flops), transcendentals=0, bytes_accessed=int(bytes_accessed)
        ),
    )(x_pad, *flat)


# ----------------------------------------------------------------------------
# Kernel 2: fused row-gather + edge_recon_fc MLP + per-edge BCE
# ----------------------------------------------------------------------------
def _edge_kernel(
    src_ids_ref, dst_ids_ref,                # scalar-prefetch (SMEM) edge node ids
    enc_hbm,                                 # enc_rep in HBM (memory_space=pl.ANY)
    w1s_ref, w1d_ref, b1_ref, w2_ref, b2_ref,
    ypred_ref, bce_ref,                      # outputs (per-edge)
    src_buf, dst_buf, sem,                   # scratch: gather buffers + DMA sems
    *, negative_slope, num_pos, m_total, tile_m,
):
    i = pl.program_id(0)
    base = i * tile_m

    # --- gather this tile's src/dst rows of enc_rep straight from HBM --------
    # (one row-DMA per sampled edge endpoint; all issued, then all waited).
    # TODO(synk): cross-step prefetch would hide gather latency further but is
    # incompatible with splitting the "parallel" grid across v7x's two cores.
    @pl.loop(0, tile_m)
    def _fetch(j):
        rs = src_ids_ref[base + j]
        rd = dst_ids_ref[base + j]
        pltpu.make_async_copy(
            enc_hbm.at[pl.ds(rs, 1), :], src_buf.at[pl.ds(j, 1), :], sem.at[0]
        ).start()
        pltpu.make_async_copy(
            enc_hbm.at[pl.ds(rd, 1), :], dst_buf.at[pl.ds(j, 1), :], sem.at[1]
        ).start()

    @pl.loop(0, tile_m)
    def _wait(j):
        pltpu.make_async_copy(
            enc_hbm.at[pl.ds(0, 1), :], src_buf.at[pl.ds(j, 1), :], sem.at[0]
        ).wait()
        pltpu.make_async_copy(
            enc_hbm.at[pl.ds(0, 1), :], dst_buf.at[pl.ds(j, 1), :], sem.at[1]
        ).wait()

    # --- edge_recon_fc: Linear -> LeakyReLU -> Linear(->1) -> Sigmoid --------
    # concat([src, dst], -1) @ W1 is computed split so no concat materializes.
    src_b = src_buf[...].astype(jnp.bfloat16)
    dst_b = dst_buf[...].astype(jnp.bfloat16)
    h = (
        jnp.dot(src_b, w1s_ref[...], preferred_element_type=jnp.float32)
        + jnp.dot(dst_b, w1d_ref[...], preferred_element_type=jnp.float32)
        + b1_ref[...]
    )
    h = _leaky_relu(h, negative_slope)

    # Second Linear has out-dim 1: VPU multiply + lane reduction (skip N=1 MXU).
    z = jnp.sum(h * w2_ref[...], axis=-1, keepdims=True) + b2_ref[...]  # [tile_m,1]
    p = jax.nn.sigmoid(z)
    ypred_ref[...] = p

    # Labels / validity from the static sample layout:
    # rows [0, num_pos) positives, [num_pos, m_total) negatives, rest padding.
    row = base + jax.lax.broadcasted_iota(jnp.int32, (tile_m, 1), 0)
    y = (row < num_pos).astype(jnp.float32)
    valid = (row < m_total).astype(jnp.float32)

    # Numerically-stable BCE from logits; the 100 clamp matches torch BCELoss's
    # per-term log clamp of -100 (labels are exactly 0/1 here).
    bce = jnp.maximum(z, 0.0) - z * y + jnp.log1p(jnp.exp(-jnp.abs(z)))
    bce = jnp.minimum(bce, 100.0)
    bce_ref[...] = bce * valid   # per-edge terms; reduced outside => grid stays parallel


def pallas_edge_mlp_bce(
    src_ids_p, dst_ids_p, enc_rep,
    w1s_p, w1d_p, b1_p, w2row_p, b2_p,
    *, negative_slope, num_pos, m_total, tile_m,
):
    m_pad = src_ids_p.shape[0]
    _, d_pad = enc_rep.shape
    h_dim = w1s_p.shape[1]
    num_tiles = m_pad // tile_m

    flops = 2 * 2 * m_pad * d_pad * h_dim + 8 * m_pad * h_dim
    bytes_accessed = (
        2 * m_pad * d_pad * 4          # gathered src/dst rows (f32, read from HBM)
        + 2 * d_pad * h_dim * 2        # W1 halves (bf16)
        + 2 * m_pad * 4                # y_pred + per-edge BCE writes
        + 2 * m_pad * 4                # sampled id reads
    )

    grid_spec = pltpu.PrefetchScalarGridSpec(
        num_scalar_prefetch=2,
        grid=(num_tiles,),
        in_specs=[
            pl.BlockSpec(memory_space=pl.ANY),                      # enc_rep (HBM)
            pl.BlockSpec((d_pad, h_dim), lambda i, s, d: (0, 0)),   # W1 (src half)
            pl.BlockSpec((d_pad, h_dim), lambda i, s, d: (0, 0)),   # W1 (dst half)
            pl.BlockSpec((1, h_dim), lambda i, s, d: (0, 0)),       # b1
            pl.BlockSpec((1, h_dim), lambda i, s, d: (0, 0)),       # W2 row
            pl.BlockSpec((1, 1), lambda i, s, d: (0, 0)),           # b2
        ],
        out_specs=(
            pl.BlockSpec((tile_m, 1), lambda i, s, d: (i, 0)),      # y_pred
            pl.BlockSpec((tile_m, 1), lambda i, s, d: (i, 0)),      # per-edge BCE
        ),
        scratch_shapes=[
            pltpu.VMEM((tile_m, d_pad), jnp.float32),   # gathered src rows
            pltpu.VMEM((tile_m, d_pad), jnp.float32),   # gathered dst rows
            pltpu.SemaphoreType.DMA((2,)),
        ],
    )

    y_pred, bce_rows = pl.pallas_call(
        functools.partial(
            _edge_kernel,
            negative_slope=negative_slope,
            num_pos=num_pos, m_total=m_total, tile_m=tile_m,
        ),
        out_shape=(
            jax.ShapeDtypeStruct((m_pad, 1), jnp.float32),
            jax.ShapeDtypeStruct((m_pad, 1), jnp.float32),
        ),
        grid_spec=grid_spec,
        compiler_params=pltpu.CompilerParams(
            dimension_semantics=("parallel",),   # no cross-tile state -> v7x 2-core split
            vmem_limit_bytes=_VMEM_LIMIT,
        ),
        cost_estimate=pl.CostEstimate(
            flops=int(flops), transcendentals=int(2 * m_pad),
            bytes_accessed=int(bytes_accessed),
        ),
    )(src_ids_p, dst_ids_p, enc_rep, w1s_p, w1d_p, b1_p, w2row_p, b2_p)

    loss = jnp.sum(bce_rows) / float(m_total)
    return y_pred[:m_total, 0], loss


# ----------------------------------------------------------------------------
# Tile / VMEM budgeting (re-derived so the v7x 64 MiB part also fits)
# ----------------------------------------------------------------------------
def _choose_tile_n(n, f0_pad, d_pad, h_dim, n_layers):
    cap = _round_up(max(n, 1), 128)
    weight_bytes = 2 * 2 * (f0_pad * h_dim + max(n_layers - 1, 0) * h_dim * h_dim)
    for t in (1024, 512, 256, 128):
        work = (
            2 * t * f0_pad * 2      # x tile (bf16, double-buffered)
            + 2 * t * d_pad * 4     # output tile (f32, double-buffered)
            + 2 * t * h_dim * 4     # per-layer activations / temporaries
        )
        if weight_bytes + work + _HEADROOM <= _VMEM_BUDGET:
            return min(t, cap)
    return min(128, cap)


def _choose_tile_m(m, d_pad, h_dim):
    cap = _round_up(max(m, 1), 128)
    weight_bytes = 2 * 2 * d_pad * h_dim * 2   # W1 halves, bf16, double-buffered
    for t in (1024, 512, 256, 128):            # >1024 avoided: 2*tile_m row-DMAs/step
        work = (
            2 * t * d_pad * 4       # f32 gather scratch (src + dst)
            + 2 * t * d_pad * 2     # bf16 casts of the gathered tiles
            + 2 * t * h_dim * 4     # hidden activation + temporaries
            + 4 * t * 4             # outputs (double-buffered)
        )
        if weight_bytes + work + _HEADROOM <= _VMEM_BUDGET:
            return min(t, cap)
    return min(128, cap)


# ----------------------------------------------------------------------------
# Deterministic parameter init (mirrors module __init__ shapes)
# ----------------------------------------------------------------------------
def xavier_uniform(key, shape):
    fan_in, fan_out = shape
    a = (6.0 / (fan_in + fan_out)) ** 0.5
    return jax.random.uniform(key, shape, jnp.float32, -a, a)


class GMAEModelPallas:
    def __init__(self, n_dim, e_dim, hidden_dim, n_layers, n_heads,
                 negative_slope=0.2, mask_rate=0.5, sr=1, key=None):
        assert hidden_dim % n_heads == 0
        self.n_dim = n_dim
        self.hidden_dim = hidden_dim
        self.n_layers = n_layers
        self.negative_slope = negative_slope
        self.mask_rate = mask_rate
        self.sr = sr

        H, L = hidden_dim, n_layers
        self.f0 = _round_up(n_dim, 128)
        self.d = H * L                                   # densely packed enc_rep width
        # 256-align the concat width when large enough (v6e/v7x 256-wide MXU K dim).
        self.d_pad = _round_up(self.d, 256) if self.d >= 256 else _round_up(self.d, 128)
        D, Dp = self.d, self.d_pad

        key = key if key is not None else jax.random.PRNGKey(0)
        ks = jax.random.split(key, 4 + L)

        # edge_recon_fc: Linear(H*L*2 -> H), LeakyReLU, Linear(H -> 1), Sigmoid
        self.er_w1 = xavier_uniform(ks[0], (2 * H * L, H))   # stored [in, out]
        self.er_b1 = jnp.zeros((H,), jnp.float32)
        self.er_w2 = xavier_uniform(ks[1], (H, 1))
        self.er_b2 = jnp.zeros((1,), jnp.float32)

        # enc_mask_token (zeros, as in nn.Parameter(torch.zeros(1, n_dim)))
        self.enc_mask_token = jnp.zeros((1, n_dim), jnp.float32)

        # encoder_to_decoder exists in __init__ but is unused by this forward path.
        self.enc2dec_w = xavier_uniform(ks[2], (H * L, H))

        # Encoder stand-in (see TODO at top): n_layers dense projections.
        self.enc_w, self.enc_b = [], []
        in_d = n_dim
        for l in range(L):
            self.enc_w.append(xavier_uniform(ks[4 + l], (in_d, H)))
            self.enc_b.append(jnp.zeros((H,), jnp.float32))
            in_d = H

        # --- padded / pre-cast device copies fed to the kernels ----------------
        # Edge kernel W1 halves, laid out for the densely packed enc_rep.
        w1s = jnp.zeros((Dp, H), jnp.float32).at[:D, :].set(self.er_w1[:D])
        w1d = jnp.zeros((Dp, H), jnp.float32).at[:D, :].set(self.er_w1[D:2 * D])
        self.w1s_p = w1s.astype(jnp.bfloat16)
        self.w1d_p = w1d.astype(jnp.bfloat16)
        self.b1_p = self.er_b1.reshape(1, H).astype(jnp.float32)
        self.w2row_p = self.er_w2[:, 0].reshape(1, H).astype(jnp.float32)
        self.b2_p = self.er_b2.reshape(1, 1).astype(jnp.float32)

        # Encoder weights (only the n_dim input side is lane-padded).
        self.enc_w_p, self.enc_b_p = [], []
        for l in range(L):
            w = self.enc_w[l]
            if l == 0:
                wp = jnp.zeros((self.f0, H), jnp.float32).at[:n_dim, :].set(w)
            else:
                wp = w
            self.enc_w_p.append(wp.astype(jnp.bfloat16))
            self.enc_b_p.append(self.enc_b[l].reshape(1, H).astype(jnp.float32))

    # --- encoding_mask_noise --------------------------------------------------
    def encoding_mask_noise(self, x, key):
        n = x.shape[0]
        perm = jax.random.permutation(key, n)
        num_mask = int(self.mask_rate * n)
        mask_nodes = perm[:num_mask]
        keep_nodes = perm[num_mask:]
        x_masked = x.at[mask_nodes].set(
            jnp.broadcast_to(self.enc_mask_token, (num_mask, self.n_dim))
        )
        return x_masked, (mask_nodes, keep_nodes)

    # --- forward == compute_edge_cl_loss -------------------------------------
    def forward(self, x, edge_src, edge_dst, key):
        k_mask, k_pos, k_neg_s, k_neg_d = jax.random.split(key, 4)
        n = x.shape[0]
        e = edge_src.shape[0]

        # 1) mask node attributes
        x_masked, _ = self.encoding_mask_noise(x, k_mask)

        # 2) fused encoder (all layers in one pallas_call), row-tiled
        tile_n = _choose_tile_n(n, self.f0, self.d_pad, self.hidden_dim, self.n_layers)
        n_pad = _round_up(n, tile_n)
        x_pad = jnp.zeros((n_pad, self.f0), jnp.bfloat16).at[:n, :self.n_dim].set(
            x_masked.astype(jnp.bfloat16)
        )
        enc_rep = pallas_encoder(
            x_pad, self.enc_w_p, self.enc_b_p, self.d_pad,
            negative_slope=self.negative_slope, tile_n=tile_n,
        )  # [n_pad, d_pad] f32, densely packed layer outputs

        # 3) deterministic edge sampling (see TODO at top)
        threshold = min(10000, n)
        num_pos = min(threshold, e)
        pos_idx = jax.random.permutation(k_pos, e)[:num_pos]
        pos_src = edge_src[pos_idx]
        pos_dst = edge_dst[pos_idx]
        neg_src = jax.random.randint(k_neg_s, (threshold,), 0, n)
        neg_dst = jax.random.randint(k_neg_d, (threshold,), 0, n)
        src_ids = jnp.concatenate([pos_src, neg_src]).astype(jnp.int32)
        dst_ids = jnp.concatenate([pos_dst, neg_dst]).astype(jnp.int32)
        m = num_pos + threshold

        tile_m = _choose_tile_m(m, self.d_pad, self.hidden_dim)
        m_pad = _round_up(m, tile_m)
        src_ids_p = jnp.pad(src_ids, (0, m_pad - m))
        dst_ids_p = jnp.pad(dst_ids, (0, m_pad - m))

        # 4) fused gather + edge_recon_fc + BCE (gather is DMA'd in-kernel,
        #    no [M, D] materialization in HBM)
        y_pred, bce = pallas_edge_mlp_bce(
            src_ids_p, dst_ids_p, enc_rep,
            self.w1s_p, self.w1d_p, self.b1_p, self.w2row_p, self.b2_p,
            negative_slope=self.negative_slope,
            num_pos=num_pos, m_total=m, tile_m=tile_m,
        )

        loss = jnp.zeros((1,), jnp.float32)
        if self.sr == 1:
            loss = loss + bce
        return loss, y_pred


# ----------------------------------------------------------------------------
if __name__ == "__main__":
    key = jax.random.PRNGKey(0)
    k_x, k_es, k_ed, k_model, k_fwd = jax.random.split(key, 5)

    # small synthetic graph
    N_NODES = 64
    N_EDGES = 32
    N_DIM = 16
    E_DIM = 8
    HIDDEN = 32
    N_LAYERS = 2
    N_HEADS = 4

    x = jax.random.normal(k_x, (N_NODES, N_DIM), jnp.float32)  # node attrs
    edge_src = jax.random.randint(k_es, (N_EDGES,), 0, N_NODES)
    edge_dst = jax.random.randint(k_ed, (N_EDGES,), 0, N_NODES)

    model = GMAEModelPallas(
        n_dim=N_DIM, e_dim=E_DIM, hidden_dim=HIDDEN, n_layers=N_LAYERS,
        n_heads=N_HEADS, negative_slope=0.2, mask_rate=0.5, sr=1, key=k_model,
    )

    loss, y_pred = model.forward(x, edge_src, edge_dst, k_fwd)
    jax.block_until_ready((loss, y_pred))

    assert loss.shape == (1,)
    assert bool(jnp.isfinite(loss).all())
    assert y_pred.shape == (min(10000, N_NODES) + min(min(10000, N_NODES), N_EDGES),)
    assert bool(jnp.all((y_pred >= 0.0) & (y_pred <= 1.0)))
    print("KERNEL_OK")
</pallas_src>

<mosaic_0001>
module attributes {stable_mosaic.version = 11 : i64} {
  func.func @_encoder_kernel(%arg0: i32, %arg1: memref<128x128xbf16, #tpu.memory_space<vmem>>, %arg2: memref<128x32xbf16, #tpu.memory_space<vmem>>, %arg3: memref<1x32xf32, #tpu.memory_space<vmem>>, %arg4: memref<32x32xbf16, #tpu.memory_space<vmem>>, %arg5: memref<1x32xf32, #tpu.memory_space<vmem>>, %arg6: memref<128x128xf32, #tpu.memory_space<vmem>>) attributes {dimension_semantics = [#tpu.dimension_semantics<parallel>], iteration_bounds = array<i64: 1>, scalar_prefetch = 0 : i64, scratch_operands = 0 : i64, tpu.core_type = #tpu.core_type<tc>, window_params = [{transform_indices = @transform_0, window_bounds = array<i64: 128, 128>}, {pipeline_mode = #tpu.pipeline_mode<synchronous>, transform_indices = @transform_1, window_bounds = array<i64: 128, 32>}, {pipeline_mode = #tpu.pipeline_mode<synchronous>, transform_indices = @transform_2, window_bounds = array<i64: 1, 32>}, {pipeline_mode = #tpu.pipeline_mode<synchronous>, transform_indices = @transform_3, window_bounds = array<i64: 32, 32>}, {pipeline_mode = #tpu.pipeline_mode<synchronous>, transform_indices = @transform_4, window_bounds = array<i64: 1, 32>}, {transform_indices = @transform_5, window_bounds = array<i64: 128, 128>}]} {
    %c0 = arith.constant 0 : index
    %c0_0 = arith.constant 0 : index
    %0 = vector.load %arg1[%c0, %c0_0] : memref<128x128xbf16, #tpu.memory_space<vmem>>, vector<128x128xbf16>
    %c0_1 = arith.constant 0 : index
    %c0_2 = arith.constant 0 : index
    %1 = vector.load %arg2[%c0_1, %c0_2] : memref<128x32xbf16, #tpu.memory_space<vmem>>, vector<128x32xbf16>
    %c0_3 = arith.constant 0 : index
    %c0_4 = arith.constant 0 : index
    %2 = vector.load %arg3[%c0_3, %c0_4] : memref<1x32xf32, #tpu.memory_space<vmem>>, vector<1x32xf32>
    %cst = arith.constant dense<0.000000e+00> : vector<128x32xf32>
    %3 = tpu.matmul %0, %1, %cst {dimension_numbers = #tpu.dot_dimension_numbers<[1], [0], [0], [1], [0, 0, 1, 1], [], []>} : vector<128x128xbf16>, vector<128x32xbf16>, vector<128x32xf32> -> vector<128x32xf32>
    %4 = vector.broadcast %2 : vector<1x32xf32> to vector<128x32xf32>
    %5 = arith.addf %3, %4 : vector<128x32xf32>
    %cst_5 = arith.constant 0.000000e+00 : f32
    %6 = vector.broadcast %cst_5 : f32 to vector<128x32xf32>
    %7 = arith.cmpf ogt, %5, %6 : vector<128x32xf32>
    %cst_6 = arith.constant 2.000000e-01 : f32
    %8 = vector.broadcast %cst_6 : f32 to vector<128x32xf32>
    %9 = arith.mulf %8, %5 : vector<128x32xf32>
    %10 = arith.select %7, %5, %9 : vector<128x32xi1>, vector<128x32xf32>
    %11 = arith.truncf %10 : vector<128x32xf32> to vector<128x32xbf16>
    %c0_7 = arith.constant 0 : index
    %c0_8 = arith.constant 0 : index
    %12 = vector.load %arg4[%c0_7, %c0_8] : memref<32x32xbf16, #tpu.memory_space<vmem>>, vector<32x32xbf16>
    %c0_9 = arith.constant 0 : index
    %c0_10 = arith.constant 0 : index
    %13 = vector.load %arg5[%c0_9, %c0_10] : memref<1x32xf32, #tpu.memory_space<vmem>>, vector<1x32xf32>
    %cst_11 = arith.constant dense<0.000000e+00> : vector<128x32xf32>
    %14 = tpu.matmul %11, %12, %cst_11 {dimension_numbers = #tpu.dot_dimension_numbers<[1], [0], [0], [1], [0, 0, 1, 1], [], []>} : vector<128x32xbf16>, vector<32x32xbf16>, vector<128x32xf32> -> vector<128x32xf32>
    %15 = vector.broadcast %13 : vector<1x32xf32> to vector<128x32xf32>
    %16 = arith.addf %14, %15 : vector<128x32xf32>
    %cst_12 = arith.constant 0.000000e+00 : f32
    %17 = vector.broadcast %cst_12 : f32 to vector<128x32xf32>
    %18 = arith.cmpf ogt, %16, %17 : vector<128x32xf32>
    %cst_13 = arith.constant 2.000000e-01 : f32
    %19 = vector.broadcast %cst_13 : f32 to vector<128x32xf32>
    %20 = arith.mulf %19, %16 : vector<128x32xf32>
    %21 = arith.select %18, %16, %20 : vector<128x32xi1>, vector<128x32xf32>
    %cst_14 = arith.constant 0.000000e+00 : f32
    %22 = vector.broadcast %cst_14 : f32 to vector<128x64xf32>
    %23 = tpu.concatenate %10, %21, %22 in 1 : vector<128x32xf32>, vector<128x32xf32>, vector<128x64xf32> -> vector<128x128xf32>
    %c0_15 = arith.constant 0 : index
    %c0_16 = arith.constant 0 : index
    %24 = vector.load %arg6[%c0_15, %c0_16] : memref<128x128xf32, #tpu.memory_space<vmem>>, vector<128x128xf32>
    tpu.vector_store %arg6[%c0_15, %c0_16], %23 {strides = array<i32>} : memref<128x128xf32, #tpu.memory_space<vmem>>, vector<128x128xf32>,
    return
  }
  func.func @transform_0(%arg0: i32) -> (i32, i32) {
    %c0_i32 = arith.constant 0 : i32
    %c0_i32_0 = arith.constant 0 : i32
    return %arg0, %c0_i32 : i32, i32
  }
  func.func @transform_1(%arg0: i32) -> (i32, i32) {
    %c0_i32 = arith.constant 0 : i32
    %c0_i32_0 = arith.constant 0 : i32
    %c0_i32_1 = arith.constant 0 : i32
    return %c0_i32, %c0_i32_0 : i32, i32
  }
  func.func @transform_2(%arg0: i32) -> (i32, i32) {
    %c0_i32 = arith.constant 0 : i32
    %c0_i32_0 = arith.constant 0 : i32
    %c0_i32_1 = arith.constant 0 : i32
    return %c0_i32, %c0_i32_0 : i32, i32
  }
  func.func @transform_3(%arg0: i32) -> (i32, i32) {
    %c0_i32 = arith.constant 0 : i32
    %c0_i32_0 = arith.constant 0 : i32
    %c0_i32_1 = arith.constant 0 : i32
    return %c0_i32, %c0_i32_0 : i32, i32
  }
  func.func @transform_4(%arg0: i32) -> (i32, i32) {
    %c0_i32 = arith.constant 0 : i32
    %c0_i32_0 = arith.constant 0 : i32
    %c0_i32_1 = arith.constant 0 : i32
    return %c0_i32, %c0_i32_0 : i32, i32
  }
  func.func @transform_5(%arg0: i32) -> (i32, i32) {
    %c0_i32 = arith.constant 0 : i32
    %c0_i32_0 = arith.constant 0 : i32
    return %arg0, %c0_i32 : i32, i32
  }
}

</mosaic_0001>

<bundles_post_ra>
// kernel: tpu_custom_call.1
= control target key start
LH: loop header
LB: loop body
LE: loop exit
PB: predicated region body
PF: predicated region fallthrough
CT: control target
= control target key end

     0   :  { %s933_s0 = inlined_call_operand.vmem [shape: bf16[128,128], index: 0, kind: input, shape index: {}]   ;;  %s934_s1 = inlined_call_operand.vmem [shape: bf16[128,32], index: 1, kind: input, shape index: {}]   ;;  %s935_s2 = inlined_call_operand.vmem [shape: f32[1,32], index: 2, kind: input, shape index: {}]   ;;  %s936_s3 = inlined_call_operand.vmem [shape: bf16[32,32], index: 3, kind: input, shape index: {}]   ;;  %s937_s4 = inlined_call_operand.vmem [shape: f32[1,32], index: 4, kind: input, shape index: {}]   ;;  %s938_s5 = inlined_call_operand.hbm [shape: f32[128,128], index: 5, kind: output, shape index: {}]  }
   0x1   :  { %v627_v0 = vld [vmem:[%s934_s1 + $0x38] sm:$0xff]  ;;  %v626_v1 = vld [vmem:[%s934_s1 + $0x30] sm:$0xff] }
   0x2   :  { %154 = vmatpush.bf16.msra.mxu0 %v627_v0  ;;  %630 = vmatpush.bf16.msra.mxu2 %v627_v0 }
   0x3   :  { %10 = vsyncpa [#allocation3], 0  ;;  %v625_v2 = vld [vmem:[%s934_s1 + $0x28] sm:$0xff]  ;;  %v624_v3 = vld [vmem:[%s934_s1 + $0x20] sm:$0xff]  ;;  %vm279_vm2 = vcmask 261120   ;;  %s520_s8 = sshll.u32 %s938_s5, 4  ;;  %s521_s8 = int_to_ptr.hbm [resolvable:$true] %s520_s8 }
   0x4   :  { %v623_v4 = vld [vmem:[%s934_s1 + $0x18] sm:$0xff]  ;;  %v622_v5 = vld [vmem:[%s934_s1 + $0x10] sm:$0xff]  ;;  %v621_v6 = vld [vmem:[%s934_s1 + $0x8] sm:$0xff]  ;;  %s674_s9 = smov 128   ;;  %s675_s10 = smov 8  }
   0x5   :  { %v620_v7 = vld [vmem:[%s934_s1] sm:$0xff]  ;;  %v613_v10 = vld [vmem:[%s933_s0 + $0x8] sm:$0xff]  ;;  %v614_v12 = vld [vmem:[%s933_s0 + $0x10] sm:$0xff] }
   0x6   :  { %155 = vmatpush.bf16.msra.mxu0 %v626_v1  ;;  %631 = vmatpush.bf16.msra.mxu2 %v626_v1  ;;  %v612_v8 = vld [vmem:[%s933_s0] sm:$0xff]  ;;  %v617_v11 = vld [vmem:[%s933_s0 + $0x28] sm:$0xff]  ;;  %v618_v13 = vld [vmem:[%s933_s0 + $0x30] sm:$0xff] }
   0x7   :  { %v616_v9 = vld [vmem:[%s933_s0 + $0x20] sm:$0xff]  ;;  %v615_v14 = vld [vmem:[%s933_s0 + $0x18] sm:$0xff]  ;;  %v629_v16 = vld [vmem:[%s936_s3 + $0x8] sm:$0xff] }
   0x8   :  { %v619_v15 = vld [vmem:[%s933_s0 + $0x38] sm:$0xff]  ;;  %310 = vmatpush.bf16.msra.mxu1 %v629_v16  ;;  %638 = vmatpush.bf16.msra.mxu3 %v629_v16  ;;  %v628_v17 = vld [vmem:[%s936_s3] sm:$0xff]  ;;  %s672_s3 = smov 32  }
   0x9   :  { %v763_v19 = vld [vmem:[%s935_s2] ss:$0 sm:$0xff] }
   0xa   :  { %156 = vmatpush.bf16.msra.mxu0 %v625_v2  ;;  %632 = vmatpush.bf16.msra.mxu2 %v625_v2 }
   0xc   :  { %311 = vmatpush.bf16.msra.mxu1 %v628_v17  ;;  %639 = vmatpush.bf16.msra.mxu3 %v628_v17 }
   0xe   :  { %157 = vmatpush.bf16.msra.mxu0 %v624_v3  ;;  %633 = vmatpush.bf16.msra.mxu2 %v624_v3 }
  0x12   :  { %158 = vmatpush.bf16.msra.mxu0 %v623_v4  ;;  %634 = vmatpush.bf16.msra.mxu2 %v623_v4 }
  0x16   :  { %159 = vmatpush.bf16.msra.mxu0 %v622_v5  ;;  %635 = vmatpush.bf16.msra.mxu2 %v622_v5 }
  0x1a   :  { %160 = vmatpush.bf16.msra.mxu0 %v621_v6  ;;  %636 = vmatpush.bf16.msra.mxu2 %v621_v6 }
  0x1e   :  { %161 = vmatpush.bf16.msra.mxu0 %v620_v7  ;;  %637 = vmatpush.bf16.msra.mxu2 %v620_v7 }
  0x21   :  { %162 = vmatmul.bf16.vlgmr.msra.gmra.mxu0 %v612_v8  ;;  %182 = vmatmul.bf16.vlgmr.msra.gmra.mxu2 %v616_v9 }
  0x31   :  { %167 = vmatmul.bf16.gmra.mxu0 %v613_v10  ;;  %187 = vmatmul.bf16.gmra.mxu2 %v617_v11 }
  0x41   :  { %172 = vmatmul.bf16.gmra.mxu0 %v614_v12  ;;  %192 = vmatmul.bf16.gmra.mxu2 %v618_v13 }
  0x51   :  { %177 = vmatmul.bf16.gmra.mxu0 %v615_v14  ;;  %197 = vmatmul.bf16.gmra.mxu2 %v619_v15 }
  0x9e   :  { %v163_v18 = vpop.f32.mrf.mxu0 }
  0x9f   :  { %v164_v20 = vadd.f32 %v763_v19, %v163_v18 }
  0xa1   :  { %v219_v24 = vmul.f32 0.2, %v164_v20  ;;  %vm203_vm0 = vcmp.gt.f32.partialorder %v164_v20, 0.0 }
  0xa3   :  { %v770_v27 = vsel %vm203_vm0, %v164_v20, %v219_v24 }
  0xa4   :  { %v183_v21 = vpop.f32.mrf.mxu2 }
  0xa5   :  { %v767_v22 = vadd.f32 %v763_v19, %v183_v21 }
  0xa6   :  { %v165_v23 = vpop.f32.mrf.mxu0 }
  0xa7   :  { %v166_v25 = vadd.f32 %v763_v19, %v165_v23  ;;  %v227_v24 = vmul.f32 0.2, %v767_v22  ;;  %vm211_vm15 = vcmp.gt.f32.partialorder %v767_v22, 0.0 }
  0xa9   :  { %vm204_vm1 = vcmp.gt.f32.partialorder %v166_v25, 0.0  ;;  %v220_v26 = vmul.f32 0.2, %v166_v25 }
  0xab   :  { %v772_v28 = vsel %vm204_vm1, %v166_v25, %v220_v26  ;;  %v838_v26 = vsel %vm211_vm15, %v767_v22, %v227_v24 }
  0xac   :  { %v774_v29 = vpop.f32.mrf.mxu2  ;;  %v251_v30 = vpack.c.bf16 %v772_v28, %v770_v27 }
  0xad   :  { %v186_v20 = vadd.f32 %v763_v19, %v774_v29  ;;  %v848_v29 = vld [vmem:[%s937_s4] ss:$0 sm:$0xff]  ;;  %s673_s4 = smov [#allocation2]  }
  0xae   :  { %v168_v31 = vpop.f32.mrf.mxu0  ;;  %604 = vmatmul.msk.bf16.vlgmr.msra.gmra.mxu1 %vm279_vm2, %v251_v30  ;;  %s518_s30 = sshll.u32 %s673_s4, 4  ;;  %s519_s30 = int_to_ptr.vmem [resolvable:$true] %s518_s30 }
  0xaf   :  { %v169_v32 = vadd.f32 %v763_v19, %v168_v31  ;;  %v228_v25 = vmul.f32 0.2, %v186_v20  ;;  %vm212_vm0 = vcmp.gt.f32.partialorder %v186_v20, 0.0 }
  0xb1   :  { %v221_v35 = vmul.f32 0.2, %v169_v32  ;;  %vm205_vm3 = vcmp.gt.f32.partialorder %v169_v32, 0.0  ;;  %v840_v30 = vsel %vm212_vm0, %v186_v20, %v228_v25 }
  0xb3   :  { %v782_v40 = vsel %vm205_vm3, %v169_v32, %v221_v35 }
  0xb4   :  { %v188_v33 = vpop.f32.mrf.mxu2 }
  0xb5   :  { %v189_v36 = vadd.f32 %v763_v19, %v188_v33 }
  0xb6   :  { %v170_v34 = vpop.f32.mrf.mxu0 }
  0xb7   :  { %v171_v37 = vadd.f32 %v763_v19, %v170_v34  ;;  %v229_v39 = vmul.f32 0.2, %v189_v36  ;;  %vm213_vm5 = vcmp.gt.f32.partialorder %v189_v36, 0.0 }
  0xb9   :  { %vm206_vm4 = vcmp.gt.f32.partialorder %v171_v37, 0.0  ;;  %v222_v38 = vmul.f32 0.2, %v171_v37  ;;  %v790_v47 = vsel %vm213_vm5, %v189_v36, %v229_v39 }
  0xbb   :  { %v784_v41 = vsel %vm206_vm4, %v171_v37, %v222_v38 }
  0xbc   :  { %v190_v42 = vpop.f32.mrf.mxu2  ;;  %v252_v43 = vpack.c.bf16 %v784_v41, %v782_v40 }
  0xbd   :  { %v191_v44 = vadd.f32 %v763_v19, %v190_v42 }
  0xbe   :  { %v173_v45 = vpop.f32.mrf.mxu0  ;;  %605 = vmatmul.msk.bf16.gmra.mxu1 %vm279_vm2, %v252_v43 }
  0xbf   :  { %vm214_vm6 = vcmp.gt.f32.partialorder %v191_v44, 0.0  ;;  %v230_v46 = vmul.f32 0.2, %v191_v44  ;;  %v174_v50 = vadd.f32 %v763_v19, %v173_v45 }
  0xc1   :  { %v792_v48 = vsel %vm214_vm6, %v191_v44, %v230_v46  ;;  %v223_v53 = vmul.f32 0.2, %v174_v50  ;;  %vm207_vm7 = vcmp.gt.f32.partialorder %v174_v50, 0.0 }
  0xc2   :  { %v256_v49 = vpack.c.bf16 %v792_v48, %v790_v47 }
  0xc3   :  { %v800_v58 = vsel %vm207_vm7, %v174_v50, %v223_v53 }
  0xc4   :  { %v193_v51 = vpop.f32.mrf.mxu2  ;;  %609 = vmatmul.msk.bf16.vlgmr.msra.gmra.mxu3 %vm279_vm2, %v256_v49 }
  0xc5   :  { %v194_v54 = vadd.f32 %v763_v19, %v193_v51 }
  0xc6   :  { %v175_v52 = vpop.f32.mrf.mxu0 }
  0xc7   :  { %v176_v55 = vadd.f32 %v763_v19, %v175_v52  ;;  %v231_v57 = vmul.f32 0.2, %v194_v54  ;;  %vm215_vm9 = vcmp.gt.f32.partialorder %v194_v54, 0.0 }
  0xc9   :  { %vm208_vm8 = vcmp.gt.f32.partialorder %v176_v55, 0.0  ;;  %v224_v56 = vmul.f32 0.2, %v176_v55  ;;  %v808_v1 = vsel %vm215_vm9, %v194_v54, %v231_v57 }
  0xcb   :  { %v802_v59 = vsel %vm208_vm8, %v176_v55, %v224_v56 }
  0xcc   :  { %v195_v60 = vpop.f32.mrf.mxu2  ;;  %v253_v61 = vpack.c.bf16 %v802_v59, %v800_v58 }
  0xcd   :  { %v196_v62 = vadd.f32 %v763_v19, %v195_v60 }
  0xce   :  { %v178_v63 = vpop.f32.mrf.mxu0  ;;  %606 = vmatmul.msk.bf16.gmra.mxu1 %vm279_vm2, %v253_v61 }
  0xcf   :  { %vm216_vm10 = vcmp.gt.f32.partialorder %v196_v62, 0.0  ;;  %v232_v0 = vmul.f32 0.2, %v196_v62  ;;  %v179_v4 = vadd.f32 %v763_v19, %v178_v63 }
  0xd1   :  { %v810_v2 = vsel %vm216_vm10, %v196_v62, %v232_v0  ;;  %v225_v7 = vmul.f32 0.2, %v179_v4  ;;  %vm209_vm11 = vcmp.gt.f32.partialorder %v179_v4, 0.0 }
  0xd2   :  { %v257_v3 = vpack.c.bf16 %v810_v2, %v808_v1 }
  0xd3   :  { %v818_v12 = vsel %vm209_vm11, %v179_v4, %v225_v7 }
  0xd4   :  { %v198_v5 = vpop.f32.mrf.mxu2  ;;  %610 = vmatmul.msk.bf16.gmra.mxu3 %vm279_vm2, %v257_v3 }
  0xd5   :  { %v199_v8 = vadd.f32 %v763_v19, %v198_v5 }
  0xd6   :  { %v180_v6 = vpop.f32.mrf.mxu0 }
  0xd7   :  { %v181_v9 = vadd.f32 %v763_v19, %v180_v6  ;;  %v233_v11 = vmul.f32 0.2, %v199_v8  ;;  %vm217_vm13 = vcmp.gt.f32.partialorder %v199_v8, 0.0 }
  0xd9   :  { %vm210_vm12 = vcmp.gt.f32.partialorder %v181_v9, 0.0  ;;  %v226_v10 = vmul.f32 0.2, %v181_v9  ;;  %v826_v18 = vsel %vm217_vm13, %v199_v8, %v233_v11 }
  0xdb   :  { %v820_v13 = vsel %vm210_vm12, %v181_v9, %v226_v10 }
  0xdc   :  { %v200_v14 = vpop.f32.mrf.mxu2  ;;  %v254_v15 = vpack.c.bf16 %v820_v13, %v818_v12 }
  0xdd   :  { %v201_v16 = vadd.f32 %v763_v19, %v200_v14  ;;  %v255_v19 = vpack.c.bf16 %v840_v30, %v838_v26 }
  0xde   :  { %607 = vmatmul.msk.bf16.gmra.mxu1 %vm279_vm2, %v254_v15 }
  0xdf   :  { %vm218_vm14 = vcmp.gt.f32.partialorder %v201_v16, 0.0  ;;  %v234_v17 = vmul.f32 0.2, %v201_v16 }
  0xe1   :  { %v830_v21 = vsel %vm218_vm14, %v201_v16, %v234_v17 }
  0xe2   :  { %v258_v23 = vpack.c.bf16 %v830_v21, %v826_v18 }
  0xe4   :  { %611 = vmatmul.msk.bf16.gmra.mxu3 %vm279_vm2, %v258_v23 }
  0xee   :  { %608 = vmatmul.msk.bf16.gmra.mxu1 %vm279_vm2, %v255_v19 }
 0x12b   :  { %v313_v31 = vpop.f32.mrf.mxu1 }
 0x12c   :  { %v314_v32 = vadd.f32 %v848_v29, %v313_v31 }
 0x12e   :  { %vm353_vm1 = vcmp.gt.f32.partialorder %v314_v32, 0.0  ;;  %v369_v33 = vmul.f32 0.2, %v314_v32 }
 0x130   :  { %v385_v34 = vsel %vm353_vm1, %v314_v32, %v369_v33 }
 0x131   :  { %417 = vrot.lane.b32.xlu0 %v385_v34, %s672_s3 }
 0x133   :  { %v315_v22 = vpop.f32.mrf.mxu1 }
 0x134   :  { %v316_v35 = vadd.f32 %v848_v29, %v315_v22 }
 0x136   :  { %v370_v36 = vmul.f32 0.2, %v316_v35  ;;  %vm354_vm3 = vcmp.gt.f32.partialorder %v316_v35, 0.0 }
 0x138   :  { %v386_v37 = vsel %vm354_vm3, %v316_v35, %v370_v36  ;;  %vm481_vm3 = vcmask 523264  }
 0x139   :  { %419 = vrot.lane.b32.xlu0 %v386_v37, %s672_s3 }
 0x13b   :  { %v318_v38 = vpop.f32.mrf.mxu1 }
 0x13c   :  { %v319_v39 = vadd.f32 %v848_v29, %v318_v38 }
 0x13e   :  { %vm355_vm4 = vcmp.gt.f32.partialorder %v319_v39, 0.0  ;;  %v371_v42 = vmul.f32 0.2, %v319_v39 }
 0x140   :  { %v387_v43 = vsel %vm355_vm4, %v319_v39, %v371_v42 }
 0x141   :  { %421 = vrot.lane.b32.xlu1 %v387_v43, %s672_s3 }
 0x143   :  { %v320_v44 = vpop.f32.mrf.mxu1 }
 0x144   :  { %v321_v45 = vadd.f32 %v848_v29, %v320_v44 }
 0x146   :  { %v372_v46 = vmul.f32 0.2, %v321_v45  ;;  %vm356_vm5 = vcmp.gt.f32.partialorder %v321_v45, 0.0 }
 0x147   :  { %v338_v49 = vpop.f32.mrf.mxu3 }
 0x148   :  { %v339_v50 = vadd.f32 %v848_v29, %v338_v49  ;;  %v388_v51 = vsel %vm356_vm5, %v321_v45, %v372_v46 }
 0x149   :  { %423 = vrot.lane.b32.xlu1 %v388_v51, %s672_s3 }
 0x14a   :  { %v379_v53 = vmul.f32 0.2, %v339_v50  ;;  %vm363_vm6 = vcmp.gt.f32.partialorder %v339_v50, 0.0 }
 0x14b   :  { %v323_v52 = vpop.f32.mrf.mxu1 }
 0x14c   :  { %v324_v54 = vadd.f32 %v848_v29, %v323_v52  ;;  %v395_v61 = vsel %vm363_vm6, %v339_v50, %v379_v53 }
 0x14e   :  { %vm357_vm7 = vcmp.gt.f32.partialorder %v324_v54, 0.0  ;;  %v373_v55 = vmul.f32 0.2, %v324_v54 }
 0x14f   :  { %v340_v56 = vpop.f32.mrf.mxu3 }
 0x150   :  { %v341_v57 = vadd.f32 %v848_v29, %v340_v56  ;;  %v389_v60 = vsel %vm357_vm7, %v324_v54, %v373_v55 }
 0x151   :  { %425 = vrot.lane.b32.xlu2 %v389_v60, %s672_s3  ;;  %437 = vrot.lane.b32.xlu1 %v395_v61, %s672_s3 }
 0x152   :  { %v380_v63 = vmul.f32 0.2, %v341_v57  ;;  %vm364_vm8 = vcmp.gt.f32.partialorder %v341_v57, 0.0 }
 0x153   :  { %v325_v62 = vpop.f32.mrf.mxu1 }
 0x154   :  { %v326_v3 = vadd.f32 %v848_v29, %v325_v62  ;;  %v396_v5 = vsel %vm364_vm8, %v341_v57, %v380_v63 }
 0x156   :  { %v374_v8 = vmul.f32 0.2, %v326_v3  ;;  %vm358_vm10 = vcmp.gt.f32.partialorder %v326_v3, 0.0 }
 0x157   :  { %v343_v0 = vpop.f32.mrf.mxu3 }
 0x158   :  { %v344_v4 = vadd.f32 %v848_v29, %v343_v0  ;;  %v390_v14 = vsel %vm358_vm10, %v326_v3, %v374_v8 }
 0x159   :  { %439 = vrot.lane.b32.xlu2 %v396_v5, %s672_s3 }
 0x15a   :  { %v381_v6 = vmul.f32 0.2, %v344_v4  ;;  %vm365_vm9 = vcmp.gt.f32.partialorder %v344_v4, 0.0 }
 0x15b   :  { %v328_v7 = vpop.f32.mrf.mxu1 }
 0x15c   :  { %v329_v9 = vadd.f32 %v848_v29, %v328_v7  ;;  %v397_v10 = vsel %vm365_vm9, %v344_v4, %v381_v6 }
 0x15d   :  { %441 = vrot.lane.b32.xlu0 %v397_v10, %s672_s3 }
 0x15e   :  { %v375_v11 = vmul.f32 0.2, %v329_v9  ;;  %vm359_vm11 = vcmp.gt.f32.partialorder %v329_v9, 0.0 }
 0x15f   :  { %v345_v15 = vpop.f32.mrf.mxu3 }
 0x160   :  { %v391_v20 = vsel %vm359_vm11, %v329_v9, %v375_v11  ;;  %v346_v24 = vadd.f32 %v848_v29, %v345_v15 }
 0x161   :  { %427 = vrot.lane.b32.xlu2 %v390_v14, %s672_s3 }
 0x162   :  { %v382_v32 = vmul.f32 0.2, %v346_v24  ;;  %vm366_vm13 = vcmp.gt.f32.partialorder %v346_v24, 0.0 }
 0x163   :  { %v330_v16 = vpop.f32.mrf.mxu1 }
 0x164   :  { %v331_v17 = vadd.f32 %v848_v29, %v330_v16  ;;  %v398_v36 = vsel %vm366_vm13, %v346_v24, %v382_v32 }
 0x165   :  { %429 = vrot.lane.b32.xlu0 %v391_v20, %s672_s3 }
 0x166   :  { %v376_v23 = vmul.f32 0.2, %v331_v17  ;;  %vm360_vm12 = vcmp.gt.f32.partialorder %v331_v17, 0.0 }
 0x167   :  { %v348_v19 = vpop.f32.mrf.mxu3 }
 0x168   :  { %v392_v25 = vsel %vm360_vm12, %v331_v17, %v376_v23  ;;  %v349_v22 = vadd.f32 %v848_v29, %v348_v19 }
 0x169   :  { %431 = vrot.lane.b32.xlu1 %v392_v25, %s672_s3 }
 0x16a   :  { %v383_v38 = vmul.f32 0.2, %v349_v22  ;;  %vm367_vm15 = vcmp.gt.f32.partialorder %v349_v22, 0.0 }
 0x16b   :  { %v333_v31 = vpop.f32.mrf.mxu1 }
 0x16c   :  { %v334_v33 = vadd.f32 %v848_v29, %v333_v31  ;;  %v399_v45 = vsel %vm367_vm15, %v349_v22, %v383_v38 }
 0x16e   :  { %v377_v34 = vmul.f32 0.2, %v334_v33  ;;  %vm361_vm14 = vcmp.gt.f32.partialorder %v334_v33, 0.0 }
 0x16f   :  { %v350_v42 = vpop.f32.mrf.mxu3 }
 0x170   :  { %v393_v35 = vsel %vm361_vm14, %v334_v33, %v377_v34  ;;  %v351_v44 = vadd.f32 %v848_v29, %v350_v42 }
 0x171   :  { %433 = vrot.lane.b32.xlu2 %v393_v35, %s672_s3  ;;  %443 = vrot.lane.b32.xlu1 %v398_v36, %s672_s3 }
 0x172   :  { %v384_v49 = vmul.f32 0.2, %v351_v44  ;;  %vm368_vm1 = vcmp.gt.f32.partialorder %v351_v44, 0.0 }
 0x173   :  { %v335_v37 = vpop.f32.mrf.mxu1 }
 0x174   :  { %v336_v39 = vadd.f32 %v848_v29, %v335_v37  ;;  %v400_v50 = vsel %vm368_vm1, %v351_v44, %v384_v49 }
 0x176   :  { %v378_v43 = vmul.f32 0.2, %v336_v39  ;;  %vm362_vm0 = vcmp.gt.f32.partialorder %v336_v39, 0.0 }
 0x178   :  { %v394_v46 = vsel %vm362_vm0, %v336_v39, %v378_v43 }
 0x179   :  { %445 = vrot.lane.b32.xlu2 %v399_v45, %s672_s3  ;;  %435 = vrot.lane.b32.xlu0 %v394_v46, %s672_s3 }
 0x181   :  { %447 = vrot.lane.b32.xlu0 %v400_v50, %s672_s3 }
 0x1a3   :  { %v418_v51 = vpop.permute.xlu0 %417 }
 0x1a4   :  { %v465_v52 = vsel %vm279_vm2, %v770_v27, %v418_v51 }
 0x1a5   :  { %v482_v53 = vsel %vm481_vm3, %v465_v52, 0.0 }
 0x1a6   :  { %498 = vst [vmem:[#allocation2] sm:$0xff] %v482_v53 }
 0x1ab   :  { %v426_v29 = vpop.permute.xlu2 %425  ;;  %v420_v54 = vpop.permute.xlu0 %419 }
 0x1ac   :  { %v469_v55 = vsel %vm279_vm2, %v800_v58, %v426_v29  ;;  %v466_v56 = vsel %vm279_vm2, %v772_v28, %v420_v54 }
 0x1ad   :  { %v486_v57 = vsel %vm481_vm3, %v469_v55, 0.0  ;;  %v483_v60 = vsel %vm481_vm3, %v466_v56, 0.0 }
 0x1ae   :  { %502 = vst [vmem:[#allocation2 + $0x20] sm:$0xff] %v486_v57 }
 0x1af   :  { %499 = vst [vmem:[#allocation2 + $0x8] sm:$0xff] %v483_v60 }
 0x1b3   :  { %v440_v61 = vpop.permute.xlu2 %439  ;;  %v422_v62 = vpop.permute.xlu1 %421 }
 0x1b4   :  { %v476_v27 = vsel %vm279_vm2, %v792_v48, %v440_v61  ;;  %v467_v63 = vsel %vm279_vm2, %v782_v40, %v422_v62 }
 0x1b5   :  { %v493_v0 = vsel %vm481_vm3, %v476_v27, 0.0  ;;  %v484_v58 = vsel %vm481_vm3, %v467_v63, 0.0 }
 0x1b6   :  { %509 = vst [vmem:[#allocation2 + $0x58] sm:$0xff] %v493_v0 }
 0x1b7   :  { %500 = vst [vmem:[#allocation2 + $0x10] sm:$0xff] %v484_v58 }
 0x1bb   :  { %v428_v28 = vpop.permute.xlu2 %427  ;;  %v424_v3 = vpop.permute.xlu1 %423 }
 0x1bc   :  { %v470_v4 = vsel %vm279_vm2, %v802_v59, %v428_v28  ;;  %v468_v5 = vsel %vm279_vm2, %v784_v41, %v424_v3 }
 0x1bd   :  { %v487_v6 = vsel %vm481_vm3, %v470_v4, 0.0  ;;  %v485_v48 = vsel %vm481_vm3, %v468_v5, 0.0 }
 0x1be   :  { %503 = vst [vmem:[#allocation2 + $0x28] sm:$0xff] %v487_v6 }
 0x1bf   :  { %501 = vst [vmem:[#allocation2 + $0x18] sm:$0xff] %v485_v48 }
 0x1c3   :  { %v438_v40 = vpop.permute.xlu1 %437 }
 0x1c4   :  { %v475_v7 = vsel %vm279_vm2, %v790_v47, %v438_v40 }
 0x1c5   :  { %v492_v8 = vsel %vm481_vm3, %v475_v7, 0.0 }
 0x1c6   :  { %508 = vst [vmem:[#allocation2 + $0x50] sm:$0xff] %v492_v8 }
 0x1cb   :  { %v434_v9 = vpop.permute.xlu2 %433 }
 0x1cc   :  { %v473_v59 = vsel %vm279_vm2, %v838_v26, %v434_v9 }
 0x1cd   :  { %v490_v10 = vsel %vm481_vm3, %v473_v59, 0.0 }
 0x1ce   :  { %506 = vst [vmem:[#allocation2 + $0x40] sm:$0xff] %v490_v10 }
 0x1cf   :  { %v442_v41 = vpop.permute.xlu0 %441 }
 0x1d0   :  { %v477_v11 = vsel %vm279_vm2, %v808_v1, %v442_v41 }
 0x1d1   :  { %v494_v14 = vsel %vm481_vm3, %v477_v11, 0.0 }
 0x1d2   :  { %510 = vst [vmem:[#allocation2 + $0x60] sm:$0xff] %v494_v14 }
 0x1d3   :  { %v446_v15 = vpop.permute.xlu2 %445 }
 0x1d4   :  { %v479_v47 = vsel %vm279_vm2, %v826_v18, %v446_v15 }
 0x1d5   :  { %v496_v16 = vsel %vm481_vm3, %v479_v47, 0.0 }
 0x1d6   :  { %512 = vst [vmem:[#allocation2 + $0x70] sm:$0xff] %v496_v16 }
 0x1d7   :  { %v430_v17 = vpop.permute.xlu0 %429 }
 0x1d8   :  { %v471_v26 = vsel %vm279_vm2, %v818_v12, %v430_v17 }
 0x1d9   :  { %v488_v20 = vsel %vm481_vm3, %v471_v26, 0.0 }
 0x1da   :  { %504 = vst [vmem:[#allocation2 + $0x30] sm:$0xff] %v488_v20 }
 0x1db   :  { %v432_v23 = vpop.permute.xlu1 %431 }
 0x1dc   :  { %v472_v1 = vsel %vm279_vm2, %v820_v13, %v432_v23 }
 0x1dd   :  { %v489_v24 = vsel %vm481_vm3, %v472_v1, 0.0 }
 0x1de   :  { %505 = vst [vmem:[#allocation2 + $0x38] sm:$0xff] %v489_v24 }
 0x1e3   :  { %v444_v25 = vpop.permute.xlu1 %443 }
 0x1e4   :  { %v478_v18 = vsel %vm279_vm2, %v810_v2, %v444_v25 }
 0x1e5   :  { %v495_v19 = vsel %vm481_vm3, %v478_v18, 0.0 }
 0x1e6   :  { %511 = vst [vmem:[#allocation2 + $0x68] sm:$0xff] %v495_v19 }
 0x1eb   :  { %v436_v31 = vpop.permute.xlu0 %435 }
 0x1ec   :  { %v474_v12 = vsel %vm279_vm2, %v840_v30, %v436_v31 }
 0x1ed   :  { %v491_v32 = vsel %vm481_vm3, %v474_v12, 0.0 }
 0x1ee   :  { %507 = vst [vmem:[#allocation2 + $0x48] sm:$0xff] %v491_v32 }
 0x1f3   :  { %v448_v13 = vpop.permute.xlu0 %447 }
 0x1f4   :  { %v480_v2 = vsel %vm279_vm2, %v830_v21, %v448_v13 }
 0x1f5   :  { %v497_v33 = vsel %vm481_vm3, %v480_v2, 0.0 }
 0x1f6   :  { %513 = vst [vmem:[#allocation2 + $0x78] sm:$0xff] %v497_v33 }
 0x1f7   :  { %526 = dma.vmem_to_hbm [thread:$0]  %s519_s30, 2048, %s521_s8, [#allocation3], %s674_s9, %s674_s9, %s675_s10  }
 0x1f8   :  { %670 = dma.done.wait [#allocation3], 2048  }
 0x1f9   :  { %671 = vsyncadd [#allocation3], 4294965248 }
 0x1fa   :  { %531 = vsyncpa [#allocation3], 1 }

</bundles_post_ra>
